<compile_context>
chip_gen: v5e
topology: v5e:2x2
jax: 0.10.0
libtpu: 0.0.40
codegen_flags: <defaults>
</compile_context>

<pallas_src>
import functools

import jax
import jax.numpy as jnp
from jax import lax
from jax.experimental import pallas as pl
from jax.experimental.pallas import tpu as pltpu


def _physical_vmem_bytes():
    """Per-core VMEM capacity; conservative v7x default if the query fails."""
    try:
        info = pltpu.get_tpu_info()
        for name in ("vmem_capacity_bytes", "vmem_bytes", "vmem_size_bytes"):
            v = getattr(info, name, None)
            if v:
                return int(v)
    except Exception:
        pass
    return 64 * 1024 * 1024


def _phase1_tile(N, P, F_in, F_out, budget_bytes, resident_bytes):
    """Largest N-tile whose score-phase working set (incl. resident W/b/q) fits."""
    # Per n-row bytes: x block (f32, double-buffered) + h / h' f32 temps.
    per_row = P * (F_in + F_out) * 4 * 2 + 32
    avail = max(budget_bytes - resident_bytes, per_row * 8)
    tn = avail // per_row
    if tn >= N:
        return N, per_row                      # whole axis (full-dim block is legal)
    tn = (tn // 16) * 16 if tn >= 16 else 8    # 16-aligned sublane tiles
    return max(8, tn), per_row


def _phase2_tile(total, P, budget_bytes):
    """Lane-dense column tile (multiple of 128) for the weighted-combine pass."""
    if total < 128:
        return total                                    # full-extent block is legal
    per_col = (P + 1) * 4 * 2 + 16                      # x + out, double-buffered
    c = (budget_bytes // per_col) // 128 * 128
    half = ((pl.cdiv(total, 2) + 127) // 128) * 128     # keep >= 2 blocks if possible
    return max(128, min(c, half, (total // 128) * 128))


def _score_kernel(x_ref, w_ref, b_ref, q_ref, part_ref, *, N, t_sub, mask_needed):
    """Phase 1: per-(core-split, metapath) partial score sums over the N axis."""
    P, tn, F_in = x_ref.shape
    F_out = w_ref.shape[1]
    c = pl.program_id(0)
    t = pl.program_id(1)

    @pl.when(t == 0)
    def _():
        part_ref[...] = jnp.zeros_like(part_ref)

    # h' = tanh(x @ W + b), all f32 (score fidelity; the matmul is not the bottleneck).
    x2 = x_ref[...].astype(jnp.float32).reshape(P * tn, F_in)
    h = jnp.dot(x2, w_ref[...], preferred_element_type=jnp.float32)
    hp = jnp.tanh(h + b_ref[...])
    hp3 = hp.reshape(P, tn, F_out)

    if mask_needed:
        g = c * t_sub + t                               # global N-tile index
        n_idx = lax.broadcasted_iota(jnp.int32, (P, tn), 1) + g * tn
        hp3 = jnp.where((n_idx < N)[:, :, None], hp3, 0.0)

    # sum_n (h'[p,n,:] . q) == (sum_n h'[p,n,:]) . q   -> no full h'*q temporary.
    gsum = jnp.sum(hp3, axis=1)                                     # (P, F_out)
    partial = jnp.sum(gsum * q_ref[...], axis=-1, keepdims=True)    # (P, 1)
    part_ref[...] += partial[None]


def _combine_kernel(att_ref, x_ref, out_ref):
    """Phase 2: softmax-weighted sum over P on a lane-dense (P, C) slab."""
    att = att_ref[...].astype(jnp.float32)              # (P, 1)
    x = x_ref[...].astype(jnp.float32)                  # (P, C)
    out_ref[...] = jnp.sum(x * att, axis=0, keepdims=True).astype(out_ref.dtype)


def semantic_attention(x, W, b, q, P, *, tile_n=None):
    """Pallas forward of SemanticAttentionLayer. x is (P*N, F_in) row-major."""
    PN, F_in = x.shape
    assert PN % P == 0, "rows of `input` must be divisible by P"
    N = PN // P
    F_out = W.shape[1]

    phys = _physical_vmem_bytes()
    vmem_limit = (phys * 3) // 4          # 48 MiB on v7x, 96 MiB on v5e/v6e
    tile_budget = vmem_limit // 2

    resident = (F_in * F_out + 2 * F_out) * 4 * 2       # W/b/q blocks, double-buffered
    tn, per_row = _phase1_tile(N, P, F_in, F_out, tile_budget, resident)
    if tile_n is not None:
        tn = min(tile_n, N)
    T = pl.cdiv(N, tn)
    n_split = 2 if T >= 2 else 1          # use both v7x TensorCores; no-op on v5e/v6e
    t_sub = pl.cdiv(T, n_split)
    mask_needed = (n_split * t_sub * tn) != N
    # Never hand the compiler a scoped-VMEM limit smaller than the true working set.
    vmem_limit_p1 = max(vmem_limit, resident + tn * per_row + (2 << 20))

    x3 = x.reshape(P, N, F_in)

    # ---- phase 1: per-metapath score partial sums ----------------------------
    partials = pl.pallas_call(
        functools.partial(_score_kernel, N=N, t_sub=t_sub, mask_needed=mask_needed),
        out_shape=jax.ShapeDtypeStruct((n_split, P, 1), jnp.float32),
        grid=(n_split, t_sub),
        in_specs=[
            pl.BlockSpec((P, tn, F_in),
                         lambda c, t: (0, jnp.minimum(c * t_sub + t, T - 1), 0)),
            pl.BlockSpec(W.shape, lambda c, t: (0, 0)),     # loop-invariant params
            pl.BlockSpec(b.shape, lambda c, t: (0, 0)),
            pl.BlockSpec(q.shape, lambda c, t: (0, 0)),
        ],
        out_specs=pl.BlockSpec((1, P, 1), lambda c, t: (c, 0, 0)),
        compiler_params=pltpu.CompilerParams(
            dimension_semantics=("parallel", "arbitrary"),
            vmem_limit_bytes=int(vmem_limit_p1)),
    )(x3, W, b, q)

    # Tiny epilogue in plain JAX: combine core partials, mean over N, exact softmax.
    scores = jnp.sum(partials, axis=0) * (1.0 / N)       # (P, 1) f32
    att = jax.nn.softmax(scores, axis=0)                 # (P, 1) f32, exact divide

    # ---- phase 2: lane-dense weighted combine of the original embeddings -----
    total = N * F_in
    c2 = _phase2_tile(total, P, tile_budget)
    T2 = pl.cdiv(total, c2)
    x_flat = x.reshape(P, total)                         # contiguous view, no copy

    out_flat = pl.pallas_call(
        _combine_kernel,
        out_shape=jax.ShapeDtypeStruct((1, total), x.dtype),
        grid=(T2,),
        in_specs=[pl.BlockSpec((P, 1), lambda t: (0, 0)),
                  pl.BlockSpec((P, c2), lambda t: (0, t))],
        out_specs=pl.BlockSpec((1, c2), lambda t: (0, t)),
        compiler_params=pltpu.CompilerParams(
            dimension_semantics=("parallel",),           # megacore-splittable on v7x
            vmem_limit_bytes=int(vmem_limit)),
    )(att, x_flat)
    # TODO(synk): for production HAN sizes, pad F_in/F_out to multiples of 128 at the
    # caller so the score-phase matmul / h' vregs are also fully lane-dense.
    return out_flat.reshape(N, F_in)


def reference(x, W, b, q, P):
    """Pure-JAX (f32) mirror of the PyTorch forward, for verification."""
    h = x @ W
    hp = jnp.tanh(h + b)
    s = (hp @ q.T).reshape(P, -1).mean(axis=1, keepdims=True)
    att = jax.nn.softmax(s, axis=0).reshape(P, 1, 1)
    return jnp.sum(x.reshape(P, -1, x.shape[1]) * att, axis=0)


def xavier_uniform(key, shape, gain):
    # PyTorch xavier_uniform_ on a 2-D tensor: fan_in = size(1), fan_out = size(0)
    fan_out, fan_in = shape[0], shape[1]
    bound = gain * (6.0 / (fan_in + fan_out)) ** 0.5
    return jax.random.uniform(key, shape, jnp.float32, -bound, bound)


if __name__ == "__main__":
    gain = 1.414
    key = jax.random.PRNGKey(0)
    key1, key2 = jax.random.split(key)

    def make_case(k, P, N, f_in, f_out):
        kx, kw, kb, kq = jax.random.split(k, 4)
        W = xavier_uniform(kw, (f_in, f_out), gain)
        b = xavier_uniform(kb, (1, f_out), gain)
        q = xavier_uniform(kq, (1, f_out), gain)
        x = jax.random.normal(kx, (P * N, f_in), jnp.float32)
        return x, W, b, q

    # Case 1: canonical small shapes (single tile, single split).
    x, W, b, q = make_case(key1, P=4, N=8, f_in=16, f_out=32)
    out = jax.block_until_ready(semantic_attention(x, W, b, q, 4))
    ref = reference(x, W, b, q, 4)
    assert out.shape == (8, 16)
    # f32 score path + exact softmax; tolerance only covers MXU/XLA default-precision
    # matmul passes and reduction-order differences.
    if not jnp.allclose(out, ref, atol=1e-2, rtol=1e-2):
        raise SystemExit("case 1: mismatch between Pallas kernel and JAX reference")

    # Case 2: ragged N-tiles + odd tile count (exercises the masked/clamped score
    # path, the 2-way core split, and a ragged lane-dense combine tile).
    x2, W2, b2, q2 = make_case(key2, P=3, N=20, f_in=16, f_out=32)
    out2 = jax.block_until_ready(semantic_attention(x2, W2, b2, q2, 3, tile_n=8))
    ref2 = reference(x2, W2, b2, q2, 3)
    assert out2.shape == (20, 16)
    if not jnp.allclose(out2, ref2, atol=1e-2, rtol=1e-2):
        raise SystemExit("case 2: mismatch between Pallas kernel and JAX reference")

    print("KERNEL_OK")
</pallas_src>

<mosaic_0001>
module attributes {stable_mosaic.version = 11 : i64} {
  func.func @_score_kernel(%arg0: i32, %arg1: i32, %arg2: memref<4x8x16xf32, #tpu.memory_space<vmem>>, %arg3: memref<16x32xf32, #tpu.memory_space<vmem>>, %arg4: memref<1x32xf32, #tpu.memory_space<vmem>>, %arg5: memref<1x32xf32, #tpu.memory_space<vmem>>, %arg6: memref<1x4x1xf32, #tpu.memory_space<vmem>>) attributes {dimension_semantics = [#tpu.dimension_semantics<parallel>, #tpu.dimension_semantics<arbitrary>], iteration_bounds = array<i64: 1, 1>, scalar_prefetch = 0 : i64, scratch_operands = 0 : i64, tpu.core_type = #tpu.core_type<tc>, window_params = [{transform_indices = @transform_0, window_bounds = array<i64: 4, 8, 16>}, {pipeline_mode = #tpu.pipeline_mode<synchronous>, transform_indices = @transform_1, window_bounds = array<i64: 16, 32>}, {pipeline_mode = #tpu.pipeline_mode<synchronous>, transform_indices = @transform_2, window_bounds = array<i64: 1, 32>}, {pipeline_mode = #tpu.pipeline_mode<synchronous>, transform_indices = @transform_3, window_bounds = array<i64: 1, 32>}, {transform_indices = @transform_4, window_bounds = array<i64: 1, 4, 1>}]} {
    %c0_i32 = arith.constant 0 : i32
    %0 = arith.cmpi eq, %arg1, %c0_i32 : i32
    %1 = arith.extui %0 : i1 to i32
    %c0_i32_0 = arith.constant 0 : i32
    %2 = arith.cmpi ne, %1, %c0_i32_0 : i32
    scf.if %2 {
      %cst_17 = arith.constant 0.000000e+00 : f32
      %22 = vector.broadcast %cst_17 : f32 to vector<1x4x1xf32>
      %c0_18 = arith.constant 0 : index
      %c0_19 = arith.constant 0 : index
      %c0_20 = arith.constant 0 : index
      %23 = vector.load %arg6[%c0_18, %c0_19, %c0_20] : memref<1x4x1xf32, #tpu.memory_space<vmem>>, vector<1x4x1xf32>
      tpu.vector_store %arg6[%c0_18, %c0_19, %c0_20], %22 {strides = array<i32>} : memref<1x4x1xf32, #tpu.memory_space<vmem>>, vector<1x4x1xf32>,
    } else {
    }
    %c0 = arith.constant 0 : index
    %c0_1 = arith.constant 0 : index
    %c0_2 = arith.constant 0 : index
    %3 = vector.load %arg2[%c0, %c0_1, %c0_2] : memref<4x8x16xf32, #tpu.memory_space<vmem>>, vector<4x8x16xf32>
    %4 = vector.shape_cast %3 : vector<4x8x16xf32> to vector<32x16xf32>
    %c0_3 = arith.constant 0 : index
    %c0_4 = arith.constant 0 : index
    %5 = vector.load %arg3[%c0_3, %c0_4] : memref<16x32xf32, #tpu.memory_space<vmem>>, vector<16x32xf32>
    %cst = arith.constant dense<0.000000e+00> : vector<32x32xf32>
    %6 = tpu.matmul %4, %5, %cst {dimension_numbers = #tpu.dot_dimension_numbers<[1], [0], [0], [1], [0, 0, 1, 1], [], []>} : vector<32x16xf32>, vector<16x32xf32>, vector<32x32xf32> -> vector<32x32xf32>
    %c0_5 = arith.constant 0 : index
    %c0_6 = arith.constant 0 : index
    %7 = vector.load %arg4[%c0_5, %c0_6] : memref<1x32xf32, #tpu.memory_space<vmem>>, vector<1x32xf32>
    %8 = vector.broadcast %7 : vector<1x32xf32> to vector<32x32xf32>
    %9 = arith.addf %6, %8 : vector<32x32xf32>
    %10 = math.tanh %9 : vector<32x32xf32>
    %11 = vector.shape_cast %10 : vector<32x32xf32> to vector<4x8x32xf32>
    %cst_7 = arith.constant dense<0.000000e+00> : vector<4x32xf32>
    %12 = vector.multi_reduction <add>, %11, %cst_7 [1] : vector<4x8x32xf32> to vector<4x32xf32>
    %c0_8 = arith.constant 0 : index
    %c0_9 = arith.constant 0 : index
    %13 = vector.load %arg5[%c0_8, %c0_9] : memref<1x32xf32, #tpu.memory_space<vmem>>, vector<1x32xf32>
    %14 = vector.broadcast %13 : vector<1x32xf32> to vector<4x32xf32>
    %15 = arith.mulf %12, %14 : vector<4x32xf32>
    %cst_10 = arith.constant dense<0.000000e+00> : vector<4xf32>
    %16 = vector.multi_reduction <add>, %15, %cst_10 [1] : vector<4x32xf32> to vector<4xf32>
    %17 = vector.shape_cast %16 : vector<4xf32> to vector<4x1xf32>
    %c0_11 = arith.constant 0 : index
    %c0_12 = arith.constant 0 : index
    %c0_13 = arith.constant 0 : index
    %18 = vector.load %arg6[%c0_11, %c0_12, %c0_13] : memref<1x4x1xf32, #tpu.memory_space<vmem>>, vector<1x4x1xf32>
    %19 = vector.shape_cast %17 : vector<4x1xf32> to vector<1x4x1xf32>
    %20 = arith.addf %18, %19 : vector<1x4x1xf32>
    %c0_14 = arith.constant 0 : index
    %c0_15 = arith.constant 0 : index
    %c0_16 = arith.constant 0 : index
    %21 = vector.load %arg6[%c0_14, %c0_15, %c0_16] : memref<1x4x1xf32, #tpu.memory_space<vmem>>, vector<1x4x1xf32>
    tpu.vector_store %arg6[%c0_14, %c0_15, %c0_16], %20 {strides = array<i32>} : memref<1x4x1xf32, #tpu.memory_space<vmem>>, vector<1x4x1xf32>,
    return
  }
  func.func @transform_0(%arg0: i32, %arg1: i32) -> (i32, i32, i32) {
    %c1_i32 = arith.constant 1 : i32
    %0 = arith.muli %arg0, %c1_i32 : i32
    %1 = arith.addi %0, %arg1 : i32
    %c0_i32 = arith.constant 0 : i32
    %2 = arith.minsi %1, %c0_i32 : i32
    %c0_i32_0 = arith.constant 0 : i32
    %c0_i32_1 = arith.constant 0 : i32
    %c0_i32_2 = arith.constant 0 : i32
    return %c0_i32_0, %2, %c0_i32_1 : i32, i32, i32
  }
  func.func @transform_1(%arg0: i32, %arg1: i32) -> (i32, i32) {
    %c0_i32 = arith.constant 0 : i32
    %c0_i32_0 = arith.constant 0 : i32
    %c0_i32_1 = arith.constant 0 : i32
    return %c0_i32, %c0_i32_0 : i32, i32
  }
  func.func @transform_2(%arg0: i32, %arg1: i32) -> (i32, i32) {
    %c0_i32 = arith.constant 0 : i32
    %c0_i32_0 = arith.constant 0 : i32
    %c0_i32_1 = arith.constant 0 : i32
    return %c0_i32, %c0_i32_0 : i32, i32
  }
  func.func @transform_3(%arg0: i32, %arg1: i32) -> (i32, i32) {
    %c0_i32 = arith.constant 0 : i32
    %c0_i32_0 = arith.constant 0 : i32
    %c0_i32_1 = arith.constant 0 : i32
    return %c0_i32, %c0_i32_0 : i32, i32
  }
  func.func @transform_4(%arg0: i32, %arg1: i32) -> (i32, i32, i32) {
    %c0_i32 = arith.constant 0 : i32
    %c0_i32_0 = arith.constant 0 : i32
    %c0_i32_1 = arith.constant 0 : i32
    return %arg0, %c0_i32, %c0_i32_0 : i32, i32, i32
  }
}

</mosaic_0001>

<bundles_post_ra>
// kernel: tpu_custom_call.1
= control target key start
LH: loop header
LB: loop body
LE: loop exit
PB: predicated region body
PF: predicated region fallthrough
CT: control target
= control target key end

     0   :  { %9 = vsyncpa [#allocation3], 0  ;;  %s320_s0 = inlined_call_operand.hbm [shape: f32[4,8,16], index: 0, kind: input, shape index: {}]   ;;  %s321_s1 = inlined_call_operand.hbm [shape: f32[16,32], index: 1, kind: input, shape index: {}]   ;;  %s322_s2 = inlined_call_operand.vmem [shape: f32[1,32], index: 2, kind: input, shape index: {}]   ;;  %s323_s3 = inlined_call_operand.vmem [shape: f32[1,32], index: 3, kind: input, shape index: {}]   ;;  %s324_s4 = inlined_call_operand.vmem [shape: f32[1,4,1], index: 4, kind: output, shape index: {}]  }
   0x1   :  { %s20_s17 = sshll.u32 %s320_s0, 4  ;;  %s21_s17 = int_to_ptr.hbm [resolvable:$true] %s20_s17 }
   0x2   :  { %10 = vsyncpa [#allocation5], 0  ;;  %s263_s18 = smov [#allocation2]   ;;  %s33_s22 = sshll.u32 %s321_s1, 4  ;;  %s34_s22 = int_to_ptr.hbm [resolvable:$true] %s33_s22 }
   0x3   :  { %s22_s19 = sshll.u32 %s263_s18, 4  ;;  %s264_s23 = smov 128   ;;  %s23_s19 = int_to_ptr.vmem [resolvable:$true] %s22_s19 }
   0x4   :  { %s265_s24 = smov 8   ;;  %s266_s25 = smov [#allocation4]  }
   0x5   :  { %28 = dma.hbm_to_vmem [thread:$0]  %s21_s17, 512, %s23_s19, [#allocation3], %s264_s23, %s264_s23, %s265_s24  }
   0x6   :  { %s35_s26 = sshll.u32 %s266_s25, 4  ;;  %s36_s26 = int_to_ptr.vmem [resolvable:$true] %s35_s26 }
   0x7   :  { %41 = dma.hbm_to_vmem [thread:$0]  %s34_s22, 256, %s36_s26, [#allocation5], %s264_s23, %s264_s23, %s265_s24  }
   0x8   :  { %259 = dma.done.wait [#allocation3], 512  }
   0x9   :  { %260 = vsyncadd [#allocation3], 4294966784 }
   0xa   :  { %261 = dma.done.wait [#allocation5], 256  }
   0xb   :  { %262 = vsyncadd [#allocation5], 4294967040  ;;  %v68_v0 = vld [vmem:[#allocation4 + $0x8] sm:$0xff]  ;;  %v67_v1 = vld [vmem:[#allocation4] sm:$0xff]  ;;  %vm73_vm0 = vcmask 130048   ;;  %vm61_vm1 = vcmask 3072  }
   0xc   :  { %190 = vmatpush.msra.mxu1 %v68_v0  ;;  %191 = vmatpush.msra.mxu2 %v68_v0  ;;  %v64_v2 = vld [vmem:[#allocation2 + $0x8] sm:$0xff]  ;;  %v65_v3 = vld [vmem:[#allocation2 + $0x10] sm:$0xff]  ;;  %v66_v4 = vld [vmem:[#allocation2 + $0x18] sm:$0xff]  ;;  %v267_v11 = vmov 0.0   ;;  %vm119_vm2 = vcmask 261120   ;;  %vm161_vm3 = vcmask 1041409  }
   0xd   :  { %192 = vmatpush.msra.mxu3 %v68_v0  ;;  %100 = vmatpush.msra.mxu0 %v68_v0  ;;  %v63_v5 = vld [vmem:[#allocation2] sm:$0xff]  ;;  %62 = vst.msk [vmem:[%s324_s4] sm:$0xf] %vm61_vm1, %v267_v11  ;;  %vm164_vm4 = vcmask 1042434   ;;  %vm167_vm5 = vcmask 1043459   ;;  %vm170_vm6 = vcmask 257024  }
   0xe   :  { %193 = vmatpush.msra.mxu1 %v67_v1  ;;  %194 = vmatpush.msra.mxu2 %v67_v1  ;;  %v201_v6 = vld [vmem:[%s322_s2] ss:$0 sm:$0xff] }
   0xf   :  { %195 = vmatpush.msra.mxu3 %v67_v1  ;;  %101 = vmatpush.msra.mxu0 %v67_v1  ;;  %v202_v38 = vld [vmem:[%s323_s3] ss:$0 sm:$0xff] }
  0x10   :  { %187 = vmatmul.msk.f32.vlgmr.msra.gmra.mxu1 %vm73_vm0, %v64_v2  ;;  %188 = vmatmul.msk.f32.vlgmr.msra.gmra.mxu2 %vm73_vm0, %v65_v3 }
  0x11   :  { %189 = vmatmul.msk.f32.vlgmr.msra.gmra.mxu3 %vm73_vm0, %v66_v4  ;;  %186 = vmatmul.msk.f32.vlgmr.msra.gmra.mxu0 %vm73_vm0, %v63_v5 }
  0x14   :  { %v174_v60 = vld [vmem:[%s324_s4] sm:$0xf] }
  0x8d   :  { %v106_v7 = vpop.f32.mrf.mxu1 }
  0x8e   :  { %v107_v8 = vadd.f32 %v201_v6, %v106_v7  ;;  %v103_v9 = vpop.f32.mrf.mxu0 }
  0x8f   :  { %v104_v10 = vadd.f32 %v201_v6, %v103_v9 }
  0x90   :  { %203 = vtanh.f32 %v107_v8 }
  0x91   :  { %205 = vtanh.f32 %v104_v10 }
  0x93   :  { %v109_v12 = vpop.f32.mrf.mxu2 }
  0x94   :  { %v110_v13 = vadd.f32 %v201_v6, %v109_v12  ;;  %v112_v14 = vpop.f32.mrf.mxu3 }
  0x95   :  { %v113_v15 = vadd.f32 %v201_v6, %v112_v14 }
  0x96   :  { %v204_v16 = vpop.eup %203  ;;  %207 = vtanh.f32 %v110_v13 }
  0x97   :  { %v206_v17 = vpop.eup %205  ;;  %v127_v18 = vsel %vm119_vm2, %v204_v16, 0.0  ;;  %209 = vtanh.f32 %v113_v15 }
  0x98   :  { %v128_v19 = vrot.slane %v127_v18, 4  ;;  %v120_v20 = vsel %vm119_vm2, %v206_v17, 0.0 }
  0x99   :  { %v121_v21 = vrot.slane %v120_v20, 4 }
  0x9a   :  { %v129_v22 = vadd.f32 %v128_v19, %v127_v18 }
  0x9b   :  { %v122_v23 = vadd.f32 %v121_v21, %v120_v20 }
  0x9c   :  { %v208_v24 = vpop.eup %207  ;;  %v130_v25 = vrot.slane %v129_v22, 2 }
  0x9d   :  { %v210_v26 = vpop.eup %209  ;;  %v123_v27 = vrot.slane %v122_v23, 2  ;;  %v134_v28 = vsel %vm119_vm2, %v208_v24, 0.0 }
  0x9e   :  { %v131_v29 = vadd.f32 %v130_v25, %v129_v22  ;;  %v135_v30 = vrot.slane %v134_v28, 4  ;;  %v141_v31 = vsel %vm119_vm2, %v210_v26, 0.0 }
  0x9f   :  { %v124_v32 = vadd.f32 %v123_v27, %v122_v23  ;;  %v142_v33 = vrot.slane %v141_v31, 4 }
  0xa0   :  { %v132_v34 = vrot.slane %v131_v29, 1  ;;  %v136_v35 = vadd.f32 %v135_v30, %v134_v28 }
  0xa1   :  { %v125_v36 = vrot.slane %v124_v32, 1  ;;  %v143_v37 = vadd.f32 %v142_v33, %v141_v31 }
  0xa2   :  { %v137_v39 = vrot.slane %v136_v35, 2  ;;  %v133_v40 = vadd.f32 %v132_v34, %v131_v29 }
  0xa3   :  { %v144_v41 = vrot.slane %v143_v37, 2  ;;  %v126_v43 = vadd.f32 %v125_v36, %v124_v32 }
  0xa4   :  { %v138_v42 = vadd.f32 %v137_v39, %v136_v35  ;;  %v153_v45 = vmul.f32 %v202_v38, %v133_v40 }
  0xa5   :  { %v145_v44 = vadd.f32 %v144_v41, %v143_v37  ;;  %v152_v50 = vmul.f32 %v202_v38, %v126_v43 }
  0xa6   :  { %v139_v46 = vrot.slane %v138_v42, 1  ;;  %v160_v51 = vrot.slane %v153_v45, 7 }
  0xa7   :  { %v146_v47 = vrot.slane %v145_v44, 1 }
  0xa8   :  { %v140_v48 = vadd.f32 %v139_v46, %v138_v42  ;;  %v162_v55 = vsel %vm161_vm3, %v160_v51, %v152_v50 }
  0xa9   :  { %v147_v49 = vadd.f32 %v146_v47, %v145_v44 }
  0xaa   :  { %v154_v52 = vmul.f32 %v202_v38, %v140_v48 }
  0xab   :  { %v155_v53 = vmul.f32 %v202_v38, %v147_v49 }
  0xac   :  { %v163_v54 = vrot.slane %v154_v52, 6 }
  0xad   :  { %v166_v56 = vrot.slane %v155_v53, 5 }
  0xae   :  { %v165_v57 = vsel %vm164_vm4, %v163_v54, %v162_v55 }
  0xaf   :  { %v168_v58 = vsel %vm167_vm5, %v166_v56, %v165_v57 }
  0xb0   :  { %v171_v59 = vsel %vm170_vm6, %v168_v58, 0.0 }
  0xb1   :  { %172 = vadd.xlane.f32.xlu0 %v171_v59 }
 0x124   :  { %v173_v61 = vpop.xlane.xlu0 %172 }
 0x125   :  { %v175_v62 = vadd.f32 %v174_v60, %v173_v61 }
 0x127   :  { %177 = vst.msk [vmem:[%s324_s4] sm:$0xf] %vm61_vm1, %v175_v62 }
 0x128   :  { %182 = vsyncpa [#allocation3], 1 }
 0x129   :  { %183 = vsyncpa [#allocation5], 1 }

</bundles_post_ra>
